<compile_context>
chip_gen: v5e
topology: v5e:2x2
jax: 0.10.0
libtpu: 0.0.40
codegen_flags: <defaults>
</compile_context>

<pallas_src>
import jax
import jax.numpy as jnp
from jax.experimental import pallas as pl
from jax.experimental.pallas import tpu as pltpu


def _bins(idx, in_size, out_size):
    """PyTorch adaptive-pool bin boundaries (static)."""
    start = (idx * in_size) // out_size
    end = ((idx + 1) * in_size + out_size - 1) // out_size
    return start, end


# ---------------------------------------------------------------------------
# Fast path: H % S == 0 and W % S == 0 (uniform kh x kw pooling windows).
# ---------------------------------------------------------------------------
def _make_fast_kernel(T, L, cutn):
    inv_t = 1.0 / T

    def kernel(facs_ref, xr_ref, noise_ref, out_ref):
        # xr_ref   : (1, T, L)       T = kh*kw window slabs, L = C*S*S lanes
        # facs_ref : (cutn, 1)       per-cutout noise factors (VMEM, resident)
        # noise_ref: (1, cutn, L)    lane-dense noise block
        # out_ref  : (1, cutn, L)    lane-dense output block
        xv = xr_ref[0].astype(jnp.float32)           # (T, L)

        acc = xv[0:1]                                # (1, L)
        mx = xv[0:1]
        for t in range(1, T):                        # static unroll, VPU only
            row = xv[t:t + 1]
            acc = acc + row
            mx = jnp.maximum(mx, row)
        pooled = 0.5 * (acc * inv_t + mx)            # (1, L) == (avg + max)/2

        # batch + facs * noise: all cutouts at once, one wide store.
        out_ref[0] = pooled + facs_ref[...] * noise_ref[0]

    return kernel


def _make_cutouts_fast(x, facs, noise, S, cutn):
    N, C, H, W = x.shape
    kh, kw = H // S, W // S
    T = kh * kw
    L = C * S * S

    # Wrapper-side layout plumbing (outside the kernel):
    #   xr[n, di*kw + dj, c*S*S + i*S + j] = x[n, c, i*kh + di, j*kw + dj]
    xr = x.reshape(N, C, S, kh, S, kw).transpose(0, 3, 5, 1, 2, 4).reshape(N, T, L)
    #   noise_k[n, c, :] = noise[c*N + n].reshape(L)
    noise_k = noise.reshape(cutn, N, L).transpose(1, 0, 2)
    facs_k = facs.reshape(cutn, 1)

    out_k = pl.pallas_call(
        _make_fast_kernel(T, L, cutn),
        out_shape=jax.ShapeDtypeStruct((N, cutn, L), jnp.float32),
        grid=(N,),
        in_specs=[
            pl.BlockSpec((cutn, 1), lambda n: (0, 0)),        # facs
            pl.BlockSpec((1, T, L), lambda n: (n, 0, 0)),     # pre-strided image slabs
            pl.BlockSpec((1, cutn, L), lambda n: (n, 0, 0)),  # noise (lane-dense)
        ],
        out_specs=pl.BlockSpec((1, cutn, L), lambda n: (n, 0, 0)),
        compiler_params=pltpu.CompilerParams(
            dimension_semantics=("parallel",)),
    )(facs_k, xr, noise_k)

    # (N, cutn, L) -> (cutn*N, C, S, S), matching torch.cat(cutouts, dim=0).
    return out_k.transpose(1, 0, 2).reshape(cutn * N, C, S, S)


# ---------------------------------------------------------------------------
# General fallback: PyTorch adaptive-pool bin loop (non-divisible sizes only).
# ---------------------------------------------------------------------------
def _make_general_kernel(C, H, W, S, cutn):
    def kernel(facs_ref, x_ref, noise_ref, out_ref):
        # x_ref: (1, C, H, W); facs_ref: (cutn,) SMEM;
        # noise_ref/out_ref: (1, cutn, C, S, S)
        x = x_ref[0].astype(jnp.float32)             # (C, H, W)
        rows = []
        for i in range(S):
            hs, he = _bins(i, H, S)
            cols = []
            for j in range(S):
                ws, we = _bins(j, W, S)
                patch = x[:, hs:he, ws:we]
                avg = jnp.mean(patch, axis=(1, 2), keepdims=True)
                mx = jnp.max(patch, axis=(1, 2), keepdims=True)
                cols.append(0.5 * (avg + mx))
            rows.append(jnp.concatenate(cols, axis=2))
        pooled = jnp.concatenate(rows, axis=1)       # (C, S, S), computed once
        for c in range(cutn):                        # static unroll over cutouts
            out_ref[0, c] = pooled + facs_ref[c] * noise_ref[0, c]

    return kernel


def _make_cutouts_general(x, facs, noise, S, cutn):
    N, C, H, W = x.shape
    noise_k = noise.reshape(cutn, N, C, S, S).transpose(1, 0, 2, 3, 4)

    out_k = pl.pallas_call(
        _make_general_kernel(C, H, W, S, cutn),
        out_shape=jax.ShapeDtypeStruct((N, cutn, C, S, S), jnp.float32),
        grid=(N,),
        in_specs=[
            pl.BlockSpec(memory_space=pltpu.MemorySpace.SMEM),            # facs scalars
            pl.BlockSpec((1, C, H, W), lambda n: (n, 0, 0, 0)),           # image
            pl.BlockSpec((1, cutn, C, S, S), lambda n: (n, 0, 0, 0, 0)),  # noise
        ],
        out_specs=pl.BlockSpec((1, cutn, C, S, S), lambda n: (n, 0, 0, 0, 0)),
        compiler_params=pltpu.CompilerParams(
            dimension_semantics=("parallel",)),
    )(facs, x, noise_k)

    return out_k.transpose(1, 0, 2, 3, 4).reshape(cutn * N, C, S, S)


def make_cutouts(x, facs, noise, cut_size, cutn):
    """x: (N, C, H, W) f32; facs: (cutn,) f32; noise: (cutn*N, C, S, S) f32."""
    _, _, H, W = x.shape
    S = cut_size
    if H % S == 0 and W % S == 0:
        return _make_cutouts_fast(x, facs, noise, S, cutn)
    return _make_cutouts_general(x, facs, noise, S, cutn)


def ref_make_cutouts(x, facs, noise, cut_size, cutn):
    """Pure-JAX reference mirroring the PyTorch forward (augs = identity)."""
    N, C, H, W = x.shape
    S = cut_size
    rows = []
    for i in range(S):
        hs, he = _bins(i, H, S)
        cols = []
        for j in range(S):
            ws, we = _bins(j, W, S)
            p = x[:, :, hs:he, ws:we]
            cols.append(0.5 * (p.mean(axis=(2, 3)) + p.max(axis=(2, 3))))
        rows.append(jnp.stack(cols, axis=-1))          # (N, C, S)
    pooled = jnp.stack(rows, axis=-2)                  # (N, C, S, S)
    batch = jnp.concatenate([pooled] * cutn, axis=0)   # (cutn*N, C, S, S)
    facs_b = jnp.repeat(facs, N)[:, None, None, None]  # per-cutout factor (exact for N=1)
    return batch + facs_b * noise


if __name__ == "__main__":
    # Note: the original module's noise broadcast ([cutn,1,1,1] vs [cutn*N,...])
    # strictly implies N == 1; for N > 1 we use the natural per-cutout
    # generalization facs[c] for row c*N + n (same as the previous version).
    N, C, H, W = 2, 4, 16, 16
    cut_size, cutn, noise_fac = 8, 4, 0.1

    key = jax.random.PRNGKey(0)
    k1, k2, k3 = jax.random.split(key, 3)
    x = jax.random.uniform(k1, (N, C, H, W), dtype=jnp.float32)
    facs = jax.random.uniform(k2, (cutn,), dtype=jnp.float32) * noise_fac
    noise = jax.random.normal(k3, (cutn * N, C, cut_size, cut_size), dtype=jnp.float32)

    out = make_cutouts(x, facs, noise, cut_size, cutn)
    out = jax.block_until_ready(out)

    ref = ref_make_cutouts(x, facs, noise, cut_size, cutn)
    assert out.shape == (cutn * N, C, cut_size, cut_size)
    assert bool(jnp.allclose(out, ref, atol=1e-5, rtol=1e-5)), "mismatch vs reference"

    print("KERNEL_OK")
</pallas_src>

<mosaic_0001>
module attributes {stable_mosaic.version = 11 : i64} {
  func.func @kernel(%arg0: i32, %arg1: memref<4x1xf32, #tpu.memory_space<vmem>>, %arg2: memref<1x4x256xf32, #tpu.memory_space<vmem>>, %arg3: memref<1x4x256xf32, #tpu.memory_space<vmem>>, %arg4: memref<1x4x256xf32, #tpu.memory_space<vmem>>) attributes {dimension_semantics = [#tpu.dimension_semantics<parallel>], iteration_bounds = array<i64: 2>, scalar_prefetch = 0 : i64, scratch_operands = 0 : i64, tpu.core_type = #tpu.core_type<tc>, window_params = [{pipeline_mode = #tpu.pipeline_mode<synchronous>, transform_indices = @transform_0, window_bounds = array<i64: 4, 1>}, {transform_indices = @transform_1, window_bounds = array<i64: 1, 4, 256>}, {transform_indices = @transform_2, window_bounds = array<i64: 1, 4, 256>}, {transform_indices = @transform_3, window_bounds = array<i64: 1, 4, 256>}]} {
    %c0 = arith.constant 0 : index
    %c0_0 = arith.constant 0 : index
    %c0_1 = arith.constant 0 : index
    %0 = vector.load %arg2[%c0, %c0_0, %c0_1] : memref<1x4x256xf32, #tpu.memory_space<vmem>>, vector<1x4x256xf32>
    %1 = vector.shape_cast %0 : vector<1x4x256xf32> to vector<4x256xf32>
    %2 = vector.extract_strided_slice %1 {offsets = [0, 0], sizes = [1, 256], strides = [1, 1]} : vector<4x256xf32> to vector<1x256xf32>
    %3 = vector.extract_strided_slice %1 {offsets = [0, 0], sizes = [1, 256], strides = [1, 1]} : vector<4x256xf32> to vector<1x256xf32>
    %4 = vector.extract_strided_slice %1 {offsets = [1, 0], sizes = [1, 256], strides = [1, 1]} : vector<4x256xf32> to vector<1x256xf32>
    %5 = arith.addf %2, %4 : vector<1x256xf32>
    %6 = arith.maximumf %3, %4 : vector<1x256xf32>
    %7 = vector.extract_strided_slice %1 {offsets = [2, 0], sizes = [1, 256], strides = [1, 1]} : vector<4x256xf32> to vector<1x256xf32>
    %8 = arith.addf %5, %7 : vector<1x256xf32>
    %9 = arith.maximumf %6, %7 : vector<1x256xf32>
    %10 = vector.extract_strided_slice %1 {offsets = [3, 0], sizes = [1, 256], strides = [1, 1]} : vector<4x256xf32> to vector<1x256xf32>
    %11 = arith.addf %8, %10 : vector<1x256xf32>
    %12 = arith.maximumf %9, %10 : vector<1x256xf32>
    %cst = arith.constant 2.500000e-01 : f32
    %13 = vector.broadcast %cst : f32 to vector<1x256xf32>
    %14 = arith.mulf %11, %13 : vector<1x256xf32>
    %15 = arith.addf %14, %12 : vector<1x256xf32>
    %cst_2 = arith.constant 5.000000e-01 : f32
    %16 = vector.broadcast %cst_2 : f32 to vector<1x256xf32>
    %17 = arith.mulf %16, %15 : vector<1x256xf32>
    %c0_3 = arith.constant 0 : index
    %c0_4 = arith.constant 0 : index
    %18 = vector.load %arg1[%c0_3, %c0_4] : memref<4x1xf32, #tpu.memory_space<vmem>>, vector<4x1xf32>
    %c0_5 = arith.constant 0 : index
    %c0_6 = arith.constant 0 : index
    %c0_7 = arith.constant 0 : index
    %19 = vector.load %arg3[%c0_5, %c0_6, %c0_7] : memref<1x4x256xf32, #tpu.memory_space<vmem>>, vector<1x4x256xf32>
    %20 = vector.shape_cast %19 : vector<1x4x256xf32> to vector<4x256xf32>
    %21 = vector.broadcast %18 : vector<4x1xf32> to vector<4x256xf32>
    %22 = arith.mulf %21, %20 : vector<4x256xf32>
    %23 = vector.broadcast %17 : vector<1x256xf32> to vector<4x256xf32>
    %24 = arith.addf %23, %22 : vector<4x256xf32>
    %c0_8 = arith.constant 0 : index
    %c0_9 = arith.constant 0 : index
    %c0_10 = arith.constant 0 : index
    %25 = vector.load %arg4[%c0_8, %c0_9, %c0_10] : memref<1x4x256xf32, #tpu.memory_space<vmem>>, vector<1x4x256xf32>
    %26 = vector.shape_cast %25 : vector<1x4x256xf32> to vector<4x256xf32>
    %27 = vector.shape_cast %24 : vector<4x256xf32> to vector<1x4x256xf32>
    tpu.vector_store %arg4[%c0_8, %c0_9, %c0_10], %27 {strides = array<i32>} : memref<1x4x256xf32, #tpu.memory_space<vmem>>, vector<1x4x256xf32>,
    return
  }
  func.func @transform_0(%arg0: i32) -> (i32, i32) {
    %c0_i32 = arith.constant 0 : i32
    %c0_i32_0 = arith.constant 0 : i32
    %c0_i32_1 = arith.constant 0 : i32
    return %c0_i32, %c0_i32_0 : i32, i32
  }
  func.func @transform_1(%arg0: i32) -> (i32, i32, i32) {
    %c0_i32 = arith.constant 0 : i32
    %c0_i32_0 = arith.constant 0 : i32
    %c0_i32_1 = arith.constant 0 : i32
    return %arg0, %c0_i32, %c0_i32_0 : i32, i32, i32
  }
  func.func @transform_2(%arg0: i32) -> (i32, i32, i32) {
    %c0_i32 = arith.constant 0 : i32
    %c0_i32_0 = arith.constant 0 : i32
    %c0_i32_1 = arith.constant 0 : i32
    return %arg0, %c0_i32, %c0_i32_0 : i32, i32, i32
  }
  func.func @transform_3(%arg0: i32) -> (i32, i32, i32) {
    %c0_i32 = arith.constant 0 : i32
    %c0_i32_0 = arith.constant 0 : i32
    %c0_i32_1 = arith.constant 0 : i32
    return %arg0, %c0_i32, %c0_i32_0 : i32, i32, i32
  }
}

</mosaic_0001>

<bundles_post_ra>
// kernel: tpu_custom_call.1
= control target key start
LH: loop header
LB: loop body
LE: loop exit
PB: predicated region body
PF: predicated region fallthrough
CT: control target
= control target key end

     0   :  { %8 = vsyncpa [#allocation3], 0  ;;  %s785_s0 = inlined_call_operand.vmem [shape: f32[4,1], index: 0, kind: input, shape index: {}]   ;;  %s786_s1 = inlined_call_operand.hbm [shape: f32[2,4,256], index: 1, kind: input, shape index: {}]   ;;  %s787_s2 = inlined_call_operand.hbm [shape: f32[2,4,256], index: 2, kind: input, shape index: {}]   ;;  %s788_s3 = inlined_call_operand.hbm [shape: f32[2,4,256], index: 3, kind: output, shape index: {}]  }
   0x1   :  { %10 = vsyncpa [#allocation3 + $0x1], 0 }
   0x2   :  { %11 = vsyncpa [#allocation6], 0 }
   0x3   :  { %13 = vsyncpa [#allocation6 + $0x1], 0 }
   0x4   :  { %14 = vsyncpa [#allocation4], 0 }
   0x5   :  { %16 = vsyncpa [#allocation4 + $0x1], 0  ;;  %s617_s12 = smov 0   ;;  %s619_s13 = smov 0  }
   0x6   :  { %s621_s14 = smov 0   ;;  %s623_s15 = smov 0  }
   0x7 LB: > { %s638_s16 = sadd.s32 4294967295, %s594_s15   ;;  %s390_s17 = sadd.s32 4294967294, %s594_s15   ;;  %s594_s15 = sphi %s623_s15, %s799_s15   ;;  %s590_s14 = sphi %s621_s14, %s798_s14   ;;  %s586_s13 = sphi %s619_s13, %s797_s13   ;;  %s582_s12 = sphi %s617_s12, %s796_s12  }
   0x8   : > { %s642_s18 = sadd.s32 1, %s594_s15   ;;  %s50_s19 = sadd.s32 1, %s590_s14 }
   0x9   : > { %s47_s20 = ssub.s32 %s594_s15, %s642_s18  ;;  %p57_p0 = scmp.ne.s32.totalorder %s590_s14, %s586_s13 }
   0xa   : > { %p48_p1 = scmp.eq.s32.totalorder %s47_s20, 0  ;;  %p58_p2 = scmp.eq.s32.totalorder %s594_s15, 0 }
   0xb   : > { %p63_p3 = scmp.ne.s32.totalorder %s586_s13, %s582_s12  ;;  %p64_p4 = scmp.eq.s32.totalorder %s638_s16, 0 }
   0xc   : > { %s654_s21 = scalar_select %p48_p1, %s590_s14, %s50_s19  }
   0xd   : > { %p656_p5 = por %p58_p2, %p57_p0  ;;  %p660_p6 = por %p64_p4, %p63_p3 }
   0xe   : > { %p113_p7 = scmp.eq.s32.totalorder %s638_s16, 1  ;;  %p119_p8 = scmp.eq.s32.totalorder %s390_s17, 1 }
   0xf   : > { %p428_p10 = scmp.lt.s32.totalorder %s594_s15, 2  ;;  %s676_s26 = sand.u32 1, %s590_s14  }
  0x10   : > { %p667_p11 = por %p113_p7, %p57_p0  ;;  %p671_p12 = por %p119_p8, %p63_p3 }
  0x11   : > { %s408_s27 = sshll.u32 %s594_s15, 3  ;;  %s393_s28 = sshll.u32 %s676_s26, 3 }
  0x12   : > { %s151_s4 = scalar_lea.hbm %s786_s1, %s408_s27  ;;  %s146_s6 = scalar_lea.vmem [#allocation2], %s393_s28 }
  0x13   : > { %s153_s5 = sshll.u32 %s151_s4, 4  ;;  %s155_s7 = sshll.u32 %s146_s6, 4  ;;  %s154_s5 = int_to_ptr.hbm [resolvable:$true] %s153_s5  ;;  %s156_s7 = int_to_ptr.vmem [resolvable:$true] %s155_s7 }
  0x14   : > { %p685_p13 = pnand %p428_p10, %p656_p5  ;;  %p399_p0 = scmp.ge.s32.totalorder %s594_s15, 1 }
  0x15   : > { %p180_p1 = scmp.lt.s32.totalorder %s594_s15, 3  ;;  %s143_s9 = scalar_lea.sflag [#allocation3], %s676_s26 }
  0x16   : > { %s464_s10 = sshra.s32 %s154_s5, 4  ;;  %p468_p3 = pneg %p685_p13  ;;  %s465_s10 = int_to_ptr.hbm [resolvable:$true] %s464_s10 }
  0x17   : > { %s466_s11 = scalar_lea.hbm %s465_s10, 8  ;;  %s471_s20 = scalar_lea.hbm %s786_s1, 16 }
  0x18   : > { %p467_p2 = scmp.ne.s32.totalorder %s465_s10, %s466_s11  ;;  %p472_p5 = scmp.lt.s32.totalorder %s465_s10, %s786_s1 }
  0x19   : > { %p473_p8 = scmp.lt.s32.totalorder %s471_s20, %s466_s11 }
  0x1a   : > { %p469_p4 = pnand %p468_p3, %p467_p2 }
  0x1b   : > { %p474_p10 = por %p473_p8, %p472_p5 }
  0x1c   : > { %p470_p7 = pneg %p469_p4 }
  0x1e   : > { %p475_p9 = pnand %p474_p10, %p470_p7 }
  0x20   : > { %478 = shalt.err (!%p475_p9)
}
  0x21   : > { %420 = dma.hbm_to_vmem [thread:$0]  (!%p685_p13), %s154_s5, 128, %s156_s7, %s143_s9  }
  0x22   : > { %p709_p2 = pnand %p399_p0, %p180_p1  ;;  %s171_s10 = scalar_lea.hbm %s787_s2, %s408_s27 }
  0x23   : > { %s173_s11 = sshll.u32 %s171_s10, 4  ;;  %s166_s17 = scalar_lea.vmem [#allocation5], %s393_s28  ;;  %s174_s11 = int_to_ptr.hbm [resolvable:$true] %s173_s11 }
  0x24   : > { %s175_s19 = sshll.u32 %s166_s17, 4  ;;  %s163_s20 = scalar_lea.sflag [#allocation6], %s676_s26  ;;  %s176_s19 = int_to_ptr.vmem [resolvable:$true] %s175_s19 }
  0x25   : > { %s494_s22 = sshra.s32 %s174_s11, 4  ;;  %s501_s9 = scalar_lea.hbm %s787_s2, 16  ;;  %s495_s22 = int_to_ptr.hbm [resolvable:$true] %s494_s22 }
  0x26   : > { %s496_s29 = scalar_lea.hbm %s495_s22, 8  ;;  %p502_p4 = scmp.lt.s32.totalorder %s495_s22, %s787_s2 }
  0x27   : > { %p497_p9 = scmp.ne.s32.totalorder %s495_s22, %s496_s29  ;;  %p503_p7 = scmp.lt.s32.totalorder %s501_s9, %s496_s29 }
  0x29   : > { %p499_p0 = pnand %p497_p9, %p468_p3  ;;  %p504_p5 = por %p503_p7, %p502_p4 }
  0x2b   : > { %p500_p1 = pneg %p499_p0 }
  0x2d   : > { %p505_p8 = pnand %p504_p5, %p500_p1 }
  0x2f   : > { %508 = shalt.err (!%p505_p8)
}
  0x30   : > { %423 = dma.hbm_to_vmem [thread:$0]  (!%p685_p13), %s174_s11, 128, %s176_s19, %s163_s20  }
  0x31   : > { %184 = sbr.rel (%p709_p2) target bundleno = 184 (0xb8), region = 32  ;;  %s731_s26 = sand.u32 (!%p709_p2), 1, %s586_s13  }
  0x32   : > { %s734_s28 = sshll.u32 (!%p709_p2), %s731_s26, 3  ;;  %s187_s6 = scalar_lea.sflag (!%p709_p2), [#allocation3], %s731_s26 }
  0x33   : > { %s190_s10 = scalar_lea.vmem (!%p709_p2), [#allocation2], %s734_s28 }
  0x36   : > { %569 = dma.done.wait (%p660_p6), %s187_s6, 128  }
  0x37   : > { %571 = vsyncadd (%p660_p6), %s187_s6, 4294967168  ;;  %s197_s8 = scalar_lea.sflag [#allocation6], %s731_s26  ;;  %s200_s30 = scalar_lea.vmem [#allocation5], %s734_s28 }
  0x38   : > { %573 = dma.done.wait (%p660_p6), %s197_s8, 128  }
  0x39   : > { %575 = vsyncadd (%p660_p6), %s197_s8, 4294967168  ;;  %v596_v0 = vmov 0   ;;  %v250_v1 = vld [vmem:[%s200_s30] sm:$0xff]  ;;  %v229_v3 = vld [vmem:[%s190_s10] sm:$0xff]  ;;  %s410_s23 = sshll.u32 %s638_s16, 3  ;;  %s228_s29 = scalar_lea.vmem [#allocation7], %s734_s28 }
  0x3a   : > { %463 = vset.pattern.permute.xlu0 %v596_v0  ;;  %v249_v2 = vld [vmem:[%s785_s0] sm:$0xf]  ;;  %257 = vst [vmem:[#allocation1] ss:$2 sm:$0xff] %v250_v1  ;;  %v231_v4 = vrot.slane %v229_v3, 5  ;;  %v236_v6 = vrot.slane %v229_v3, 6  ;;  %s292_s22 = scalar_lea.hbm %s788_s3, %s410_s23 }
  0x3b   : > { %253 = vperm.xlu0 %463, %v249_v2   ;;  %v241_v9 = vrot.slane %v229_v3, 7  ;;  %s294_s5 = sshll.u32 %s228_s29, 4  ;;  %s296_s7 = sshll.u32 %s292_s22, 4  ;;  %vm276_vm0 = vcmask 1043456   ;;  %s295_s5 = int_to_ptr.vmem [resolvable:$true] %s294_s5  ;;  %s297_s7 = int_to_ptr.hbm [resolvable:$true] %s296_s7 }
  0x3c   : > { %v232_v5 = vrot.slane %v231_v4, 4  ;;  %v237_v8 = vrot.slane %v236_v6, 4  ;;  %s281_s16 = scalar_lea.sflag [#allocation4], %s731_s26  ;;  %s538_s9 = sshra.s32 %s297_s7, 4  ;;  %s539_s9 = int_to_ptr.hbm [resolvable:$true] %s538_s9 }
  0x3d   : > { %v242_v12 = vrot.slane %v241_v9, 4  ;;  %s540_s4 = scalar_lea.hbm %s539_s9, 8  ;;  %s544_s28 = scalar_lea.hbm %s788_s3, 16 }
  0x3e   : > { %v234_v7 = vadd.f32 %v232_v5, %v229_v3  ;;  %v235_v10 = vmax.f32 %v229_v3, %v232_v5  ;;  %p541_p6 = scmp.ne.s32.totalorder %s539_s9, %s540_s4  ;;  %p545_p10 = scmp.lt.s32.totalorder %s539_s9, %s788_s3 }
  0x3f   : > { %p546_p2 = scmp.lt.s32.totalorder %s544_s28, %s540_s4 }
  0x40   : > { %v239_v11 = vadd.f32 %v237_v8, %v234_v7  ;;  %v240_v13 = vmax.f32 %v235_v10, %v237_v8  ;;  %p542_p13 = pnand %p541_p6, %p667_p11 }
  0x41   : > { %v258_v21 = vld.sshfl [vmem:[#allocation1] sm:$0xff pattern:$0x75316420]  ;;  %v259_v22 = vld.sshfl [vmem:[#allocation1 + $0x8] sm:$0xff pattern:$0x75316420]  ;;  %p547_p9 = por %p546_p2, %p545_p10 }
  0x42   : > { %v244_v14 = vadd.f32 %v242_v12, %v239_v11  ;;  %v245_v15 = vmax.f32 %v240_v13, %v242_v12  ;;  %p543_p3 = pneg %p542_p13 }
  0x44   : > { %v246_v16 = vmul.f32 0.25, %v244_v14  ;;  %p548_p0 = pnand %p547_p9, %p543_p3 }
  0x46   : > { %v247_v17 = vadd.f32 %v246_v16, %v245_v15 }
  0x48   : > { %v248_v18 = vmul.f32 0.5, %v247_v17 }
  0x4a   : > { %v266_v19 = vperm.slane %v248_v18, 4  ;;  %v265_v20 = vperm.slane %v248_v18, 0 }
  0x4c   : > { %v270_v23 = vperm.slane %v266_v19, 0  ;;  %v269_v27 = vperm.slane %v265_v20, 0 }
  0xad   : > { %v254_v24 = vpop.permute.xlu0 %253 }
  0xae   : > { %v262_v25 = vmul.f32 %v258_v21, %v254_v24  ;;  %v263_v26 = vmul.f32 %v259_v22, %v254_v24 }
  0xb0   : > { %v272_v28 = vadd.f32 %v270_v23, %v263_v26  ;;  %v271_v29 = vadd.f32 %v269_v27, %v262_v25 }
  0xb2   : > { %v275_v30 = vrot.slane %v272_v28, 4 }
  0xb4   : > { %v277_v31 = vsel %vm276_vm0, %v271_v29, %v275_v30 }
  0xb5   : > { %279 = vst [vmem:[%s228_s29] sm:$0xff] %v277_v31 }
  0xb6   : > { %551 = shalt.err (!%p548_p0)
}
  0xb7   : > { %415 = dma.vmem_to_hbm [thread:$0]  (%p667_p11), %s295_s5, 128, %s297_s7, %s281_s16  }
  0xb8 PF: > { %s308_s26 = sand.u32 1, %s582_s12   ;;  %p795_p1 = scmp.ge.s32.totalorder %s594_s15, 2 }
  0xb9   : > { %s309_s30 = scalar_lea.sflag [#allocation4], %s308_s26 }
  0xba   : > { %p425_p4 = pnand %p795_p1, %p671_p12 }
  0xbc   : > { %p426_p7 = pneg %p425_p4 }
  0xbe   : > { %577 = dma.done.wait (%p426_p7), %s309_s30, 128  }
  0xbf   : > { %579 = vsyncadd (%p426_p7), %s309_s30, 4294967168  ;;  %p19_p5 = scmp.ge.s32.totalorder %s642_s18, 4   ;;  %s796_s12 = smov %s586_s13 }
  0xc0   : > { %s797_s13 = smov %s590_s14  ;;  %s798_s14 = smov %s654_s21 }
  0xc1   : > { %s799_s15 = smov %s642_s18  ;;  %21 = sbr.rel (!%p19_p5) target bundleno = 7 (0x7), region = 90 }
  0xc6   :  { %315 = vsyncpa [#allocation3], 1 }
  0xc7   :  { %317 = vsyncpa [#allocation3 + $0x1], 1 }
  0xc8   :  { %318 = vsyncpa [#allocation6], 1 }
  0xc9   :  { %320 = vsyncpa [#allocation6 + $0x1], 1 }
  0xca   :  { %321 = vsyncpa [#allocation4], 1 }
  0xcb   :  { %323 = vsyncpa [#allocation4 + $0x1], 1 }

</bundles_post_ra>
